<compile_context>
chip_gen: v7x
topology: tpu7x:2x2x1
jax: 0.10.0
libtpu: 0.0.40
codegen_flags: <defaults>
</compile_context>

<pallas_src>
import jax
import jax.numpy as jnp
from jax.experimental import pallas as pl
from jax.experimental.pallas import tpu as pltpu


def _round_up(x: int, m: int) -> int:
    return ((x + m - 1) // m) * m


def gmf_kernel(u_ref, r_ref, o_ref):
    # u_ref: (TMP, N) bf16 packed user rows   (streamed, double-buffered)
    # r_ref: (N, N)   bf16 block-diag item    (VMEM-resident across grid)
    # o_ref: (TMP, N) bf16 packed ratings     (lane-dense stores)
    logits = jnp.dot(u_ref[...], r_ref[...], preferred_element_type=jnp.float32)
    # Numerically stable sigmoid with a single EUP transcendental per element.
    ratings = 0.5 + 0.5 * jnp.tanh(0.5 * logits)
    o_ref[...] = ratings.astype(o_ref.dtype)


def gmf_forward(user_table, item_table, user_idx, item_idx, *, block_rows=4096):
    """Reproduces GMF.forward(user, item) semantics.

    user_idx: (M,) int32 indices into user_table (num_users, D)
    item_idx: (K,) int32 indices into item_table (num_items, D); K must equal D
              for torch.matmul((M,D),(K,D)) to be valid, exactly as in PyTorch.
    Returns (M, D) bfloat16 ratings = sigmoid(user_vec @ item_vec).
    """
    # Wrapper-side gather (fusible with the bf16 cast / pad by XLA); fusing the
    # gather into the kernel via pl.Element would force one grid step per row
    # and destroy the large-tile pipeline.
    user_vec = jnp.take(user_table, user_idx, axis=0).astype(jnp.bfloat16)  # (M, D)
    item_vec = jnp.take(item_table, item_idx, axis=0)                       # (K, D)

    M, D = user_vec.shape
    K = item_vec.shape[0]
    assert K == D, "torch.matmul((M,D),(K,D)) requires K == D"

    # Lane packing factor: fold P output rows into one >=128-lane row.
    P = (128 // D) if (D < 128 and 128 % D == 0) else 1
    N = P * D

    # Block-diagonal RHS (tiny; e.g. 128x128 for D=32), bf16 for the MXU.
    rhs = jnp.kron(
        jnp.eye(P, dtype=jnp.float32), item_vec.astype(jnp.float32)
    ).astype(jnp.bfloat16)

    # Adaptive tile sizing over packed rows: split the packed rows evenly over
    # the number of grid steps implied by `block_rows`, rounding the tile to a
    # multiple of 16 sublanes.  Padding waste is < 16 packed rows per step
    # (instead of up to a whole tile), and a 4096-row tile is ~2 MiB streamed
    # bf16 per step (~4.5 MiB double-buffered incl. RHS) -- safely under the
    # scoped-VMEM defaults on v5e (16 MiB), v6e (32 MiB) and v7x (32 MiB).
    packed_rows = -(-M // P)
    n_steps = -(-packed_rows // block_rows)
    tmp_rows = _round_up(-(-packed_rows // n_steps), 16)
    padded_packed = tmp_rows * n_steps
    m_pad = padded_packed * P

    u = jnp.pad(user_vec, ((0, m_pad - M), (0, 0)))   # ragged-tile padding (bf16)
    u = u.reshape(padded_packed, N)                   # row-major pack (free)

    cost = pl.CostEstimate(
        flops=2 * padded_packed * N * N,
        transcendentals=padded_packed * N,            # one tanh per element
        bytes_accessed=u.size * 2 + rhs.size * 2 + padded_packed * N * 2,
    )

    out = pl.pallas_call(
        gmf_kernel,
        out_shape=jax.ShapeDtypeStruct((padded_packed, N), jnp.bfloat16),
        grid_spec=pltpu.PrefetchScalarGridSpec(
            num_scalar_prefetch=0,
            grid=(n_steps,),
            in_specs=[
                pl.BlockSpec((tmp_rows, N), lambda i: (i, 0)),  # streamed user tile
                pl.BlockSpec((N, N), lambda i: (0, 0)),         # resident block-diag
            ],
            out_specs=pl.BlockSpec((tmp_rows, N), lambda i: (i, 0)),
        ),
        compiler_params=pltpu.CompilerParams(
            dimension_semantics=("parallel",),      # v7x: shard M-tiles across TCs
            vmem_limit_bytes=32 * 1024 * 1024,      # headroom for bigger block_rows
            allow_input_fusion=[True, True],        # fuse gather/cast/pad producer
        ),
        cost_estimate=cost,
    )(u, rhs)

    # Un-pack lanes back to (M, D); row-major reshape is free.  The [:M] slice is
    # kept for API parity with the PyTorch module -- downstream consumers that
    # tolerate padded rows can take the packed output directly.
    return out.reshape(m_pad, D)[:M]


def init_gmf_params(key, num_users, num_items, latent_dim, dtype=jnp.bfloat16):
    # torch.nn.init.normal_(weight, std=0.01) for both embedding tables.
    # Tables stored in bf16: halves the gather-side HBM read for this
    # bandwidth-bound forward pass (init std 0.01 is far from bf16 precision
    # limits); pass dtype=jnp.float32 for bit-parity with the f32 module.
    ku, ki = jax.random.split(key)
    user_table = (0.01 * jax.random.normal(ku, (num_users, latent_dim), jnp.float32)).astype(dtype)
    item_table = (0.01 * jax.random.normal(ki, (num_items, latent_dim), jnp.float32)).astype(dtype)
    # TODO(synk): `predict_layer` is referenced in _init_weight_ but never defined
    # nor used in forward(); it is omitted here.
    return user_table, item_table


if __name__ == "__main__":
    key = jax.random.PRNGKey(0)
    num_users, num_items, latent_dim = 64, 128, 32
    M = 8            # batch of user indices
    K = latent_dim   # number of item indices; must equal latent_dim for matmul

    k_param, k_u, k_i = jax.random.split(key, 3)
    user_table, item_table = init_gmf_params(k_param, num_users, num_items, latent_dim)

    user_idx = jax.random.randint(k_u, (M,), 0, num_users, dtype=jnp.int32)
    item_idx = jax.random.randint(k_i, (K,), 0, num_items, dtype=jnp.int32)

    ratings = gmf_forward(user_table, item_table, user_idx, item_idx)
    ratings = jax.block_until_ready(ratings)

    # Pure-JAX f32 reference of the same semantics (kernel uses bf16 operands,
    # a bf16 output and an EUP tanh-form sigmoid, so allow a loose tolerance).
    uv = jnp.take(user_table, user_idx, axis=0).astype(jnp.float32)
    iv = jnp.take(item_table, item_idx, axis=0).astype(jnp.float32)
    ref = jax.nn.sigmoid(uv @ iv)

    assert ratings.shape == (M, latent_dim)
    assert jnp.allclose(ratings.astype(jnp.float32), ref, atol=1e-2), "mismatch vs reference"

    print("KERNEL_OK")
</pallas_src>

<mosaic_0001>
module attributes {stable_mosaic.version = 11 : i64} {
  func.func @gmf_kernel(%arg0: i32, %arg1: memref<16x128xbf16, #tpu.memory_space<vmem>>, %arg2: memref<128x128xbf16, #tpu.memory_space<vmem>>, %arg3: memref<16x128xbf16, #tpu.memory_space<vmem>>) attributes {dimension_semantics = [#tpu.dimension_semantics<parallel>], iteration_bounds = array<i64: 1>, scalar_prefetch = 0 : i64, scratch_operands = 0 : i64, tpu.core_type = #tpu.core_type<tc>, window_params = [{transform_indices = @transform_0, window_bounds = array<i64: 16, 128>}, {pipeline_mode = #tpu.pipeline_mode<synchronous>, transform_indices = @transform_1, window_bounds = array<i64: 128, 128>}, {transform_indices = @transform_2, window_bounds = array<i64: 16, 128>}]} {
    %c0 = arith.constant 0 : index
    %c0_0 = arith.constant 0 : index
    %0 = vector.load %arg1[%c0, %c0_0] : memref<16x128xbf16, #tpu.memory_space<vmem>>, vector<16x128xbf16>
    %c0_1 = arith.constant 0 : index
    %c0_2 = arith.constant 0 : index
    %1 = vector.load %arg2[%c0_1, %c0_2] : memref<128x128xbf16, #tpu.memory_space<vmem>>, vector<128x128xbf16>
    %cst = arith.constant dense<0.000000e+00> : vector<16x128xf32>
    %2 = tpu.matmul %0, %1, %cst {dimension_numbers = #tpu.dot_dimension_numbers<[1], [0], [0], [1], [0, 0, 1, 1], [], []>} : vector<16x128xbf16>, vector<128x128xbf16>, vector<16x128xf32> -> vector<16x128xf32>
    %cst_3 = arith.constant 5.000000e-01 : f32
    %3 = vector.broadcast %cst_3 : f32 to vector<16x128xf32>
    %4 = arith.mulf %3, %2 : vector<16x128xf32>
    %5 = math.tanh %4 : vector<16x128xf32>
    %cst_4 = arith.constant 5.000000e-01 : f32
    %6 = vector.broadcast %cst_4 : f32 to vector<16x128xf32>
    %7 = arith.mulf %6, %5 : vector<16x128xf32>
    %cst_5 = arith.constant 5.000000e-01 : f32
    %8 = vector.broadcast %cst_5 : f32 to vector<16x128xf32>
    %9 = arith.addf %8, %7 : vector<16x128xf32>
    %10 = arith.truncf %9 : vector<16x128xf32> to vector<16x128xbf16>
    %c0_6 = arith.constant 0 : index
    %c0_7 = arith.constant 0 : index
    %11 = vector.load %arg3[%c0_6, %c0_7] : memref<16x128xbf16, #tpu.memory_space<vmem>>, vector<16x128xbf16>
    tpu.vector_store %arg3[%c0_6, %c0_7], %10 {strides = array<i32>} : memref<16x128xbf16, #tpu.memory_space<vmem>>, vector<16x128xbf16>,
    return
  }
  func.func @transform_0(%arg0: i32) -> (i32, i32) {
    %c0_i32 = arith.constant 0 : i32
    %c0_i32_0 = arith.constant 0 : i32
    return %arg0, %c0_i32 : i32, i32
  }
  func.func @transform_1(%arg0: i32) -> (i32, i32) {
    %c0_i32 = arith.constant 0 : i32
    %c0_i32_0 = arith.constant 0 : i32
    %c0_i32_1 = arith.constant 0 : i32
    return %c0_i32, %c0_i32_0 : i32, i32
  }
  func.func @transform_2(%arg0: i32) -> (i32, i32) {
    %c0_i32 = arith.constant 0 : i32
    %c0_i32_0 = arith.constant 0 : i32
    return %arg0, %c0_i32 : i32, i32
  }
}

</mosaic_0001>

<bundles_post_ra>
// kernel: tpu_custom_call.1
= control target key start
LH: loop header
LB: loop body
LE: loop exit
PB: predicated region body
PF: predicated region fallthrough
CT: control target
= control target key end

     0   :  { %7 = vsyncpa [#allocation3], 0  ;;  %s396_s0 = inlined_call_operand.hbm [shape: bf16[16,128], index: 0, kind: input, shape index: {}]   ;;  %s397_s1 = inlined_call_operand.hbm [shape: bf16[128,128], index: 1, kind: input, shape index: {}]   ;;  %s398_s2 = inlined_call_operand.hbm [shape: bf16[16,128], index: 2, kind: output, shape index: {}]  }
   0x1   :  { %8 = vsyncpa [#allocation6], 0 }
   0x2   :  { %9 = vsyncpa [#allocation4], 0  ;;  %s329_s9 = smov [#allocation2]   ;;  %s257_s13 = scalar_lea.hbm %s396_s0, 128 }
   0x3   :  { %s15_s10 = sshll.u32 %s329_s9, 4  ;;  %p258_p0 = scmp.ne.s32.totalorder %s396_s0, %s257_s13  ;;  %s16_s10 = int_to_ptr.vmem [resolvable:$true] %s15_s10 }
   0x4   :  { %p261_p1 = scmp.lt.u32.totalorder %s257_s13, %s396_s0 }
   0x6   :  { %p263_p2 = pnand %p261_p1, %p258_p0 }
   0x8   :  { %266 = shalt.err (!%p263_p2)
}
   0x9   :  { %s267_s18 = scalar_lea.vmem %s16_s10, 128  ;;  %p272_p4 = scmp.lt.s32.totalorder %s16_s10, %s16_s10 }
   0xa   :  { %p268_p3 = scmp.ne.s32.totalorder %s16_s10, %s267_s18  ;;  %p273_p5 = scmp.lt.s32.totalorder %s267_s18, %s267_s18 }
   0xc   :  { %p274_p6 = por %p273_p5, %p272_p4 }
   0xe   :  { %p275_p7 = pnand %p274_p6, %p268_p3 }
  0x10   :  { %278 = shalt.err (!%p275_p7)
}
  0x11   :  { %s330_s19 = smov 64   ;;  %s331_s20 = smov 4  }
  0x12   :  { %21 = dma.hbm_to_vmem [thread:$0]  %s396_s0, 128, %s16_s10, [#allocation3], %s330_s19, %s330_s19, %s331_s20  }
  0x13   :  { %s332_s23 = smov [#allocation5]   ;;  %s279_s27 = scalar_lea.hbm %s397_s1, 1024 }
  0x14   :  { %s27_s24 = sshll.u32 %s332_s23, 4  ;;  %p280_p8 = scmp.ne.s32.totalorder %s397_s1, %s279_s27  ;;  %s28_s24 = int_to_ptr.vmem [resolvable:$true] %s27_s24 }
  0x15   :  { %p283_p9 = scmp.lt.u32.totalorder %s279_s27, %s397_s1 }
  0x17   :  { %p285_p10 = pnand %p283_p9, %p280_p8 }
  0x19   :  { %288 = shalt.err (!%p285_p10)
}
  0x1a   :  { %s289_s4 = scalar_lea.vmem %s28_s24, 1024  ;;  %p294_p12 = scmp.lt.s32.totalorder %s28_s24, %s28_s24 }
  0x1b   :  { %p290_p11 = scmp.ne.s32.totalorder %s28_s24, %s289_s4  ;;  %p295_p13 = scmp.lt.s32.totalorder %s289_s4, %s289_s4 }
  0x1d   :  { %p296_p0 = por %p295_p13, %p294_p12 }
  0x1f   :  { %p297_p1 = pnand %p296_p0, %p290_p11 }
  0x21   :  { %300 = shalt.err (!%p297_p1)
}
  0x22   :  { %33 = dma.hbm_to_vmem [thread:$0]  %s397_s1, 1024, %s28_s24, [#allocation6], %s330_s19, %s330_s19, %s331_s20  }
  0x23   :  { %323 = dma.done.wait [#allocation3], 128  }
  0x24   :  { %324 = vsyncadd [#allocation3], 4294967168 }
  0x25   :  { %325 = dma.done.wait [#allocation6], 1024  }
  0x26   :  { %326 = vsyncadd [#allocation6], 4294966272  ;;  %v333_v0 = vmov 0.0   ;;  %vm334_vm0 = vmmov 0   ;;  %v244_v1 = vld [vmem:[#allocation5] sm:$0xff]   ;;  %v245_v2 = vld [vmem:[#allocation5 + $0x8] sm:$0xff]  }
  0x27   :  { %217 = vmatprep.subr.bf16.mxu0 %v333_v0  ;;  %233 = vmatprep.mubr.msk.bf16.mxu0 %vm334_vm0, %v333_v0  ;;  %v246_v3 = vld [vmem:[#allocation5 + $0x10] sm:$0xff]   ;;  %v247_v4 = vld [vmem:[#allocation5 + $0x18] sm:$0xff]   ;;  %v248_v5 = vld [vmem:[#allocation5 + $0x20] sm:$0xff]   ;;  %s335_s1 = smov [#allocation7]  }
  0x28   :  { %218 = vmatpush3.bf16.msra.mxu0 %v244_v1  ;;  %v249_v6 = vld [vmem:[#allocation5 + $0x28] sm:$0xff]   ;;  %v250_v7 = vld [vmem:[#allocation5 + $0x30] sm:$0xff]   ;;  %v251_v8 = vld [vmem:[#allocation5 + $0x38] sm:$0xff]   ;;  %s177_s6 = sshll.u32 %s335_s1, 4  ;;  %s178_s6 = int_to_ptr.vmem [resolvable:$true] %s177_s6 }
  0x29   :  { %219 = vmatprep.subr.bf16.mxu0 %v333_v0  ;;  %v252_v9 = vld [vmem:[#allocation2] sm:$0xff]   ;;  %s301_s7 = scalar_lea.vmem %s178_s6, 128  ;;  %p306_p3 = scmp.lt.s32.totalorder %s178_s6, %s178_s6 }
  0x2a   :  { %p302_p2 = scmp.ne.s32.totalorder %s178_s6, %s301_s7  ;;  %p307_p4 = scmp.lt.s32.totalorder %s301_s7, %s301_s7 }
  0x2c   :  { %220 = vmatpush3.bf16.msra.mxu0 %v245_v2  ;;  %p308_p5 = por %p307_p4, %p306_p3 }
  0x2d   :  { %221 = vmatprep.subr.bf16.mxu0 %v333_v0 }
  0x2e   :  { %p309_p6 = pnand %p308_p5, %p302_p2 }
  0x30   :  { %222 = vmatpush3.bf16.msra.mxu0 %v246_v3 }
  0x31   :  { %223 = vmatprep.subr.bf16.mxu0 %v333_v0 }
  0x34   :  { %224 = vmatpush3.bf16.msra.mxu0 %v247_v4 }
  0x35   :  { %225 = vmatprep.subr.bf16.mxu0 %v333_v0 }
  0x38   :  { %226 = vmatpush3.bf16.msra.mxu0 %v248_v5 }
  0x39   :  { %227 = vmatprep.subr.bf16.mxu0 %v333_v0 }
  0x3c   :  { %228 = vmatpush3.bf16.msra.mxu0 %v249_v6 }
  0x3d   :  { %229 = vmatprep.subr.bf16.mxu0 %v333_v0 }
  0x40   :  { %230 = vmatpush3.bf16.msra.mxu0 %v250_v7 }
  0x41   :  { %231 = vmatprep.subr.bf16.mxu0 %v333_v0 }
  0x44   :  { %232 = vmatpush3.bf16.msra.mxu0 %v251_v8 }
  0x47   :  { %234 = vmatmul.mubr.bf16.vlgmr.msra.gmra.mrb[0].mxu0 %v252_v9 }
 0x11a   :  { %v147_v10 = vpop.f32.mrb[0].mxu0 }
 0x11b   :  { %v154_v11 = vmul.f32 0.5, %v147_v10  ;;  %v235_v12 = vpop.f32.mrb[1].mxu0 }
 0x11c   :  { %v150_v13 = vpop.f32.mrb[2].mxu0 }
 0x11d   :  { %253 = vtanh.f32 %v154_v11  ;;  %v155_v14 = vmul.f32 0.5, %v150_v13  ;;  %v236_v15 = vpop.f32.mrb[3].mxu0 }
 0x11f   :  { %255 = vtanh.f32 %v155_v14 }
 0x127   :  { %v254_v16 = vpop.eup %253 }
 0x128   :  { %v158_v17 = vmul.f32 0.5, %v254_v16 }
 0x129   :  { %v256_v18 = vpop.eup %255 }
 0x12a   :  { %v159_v19 = vmul.f32 0.5, %v256_v18  ;;  %v160_v20 = vadd.f32 0.5, %v158_v17 }
 0x12c   :  { %v161_v21 = vadd.f32 0.5, %v159_v19 }
 0x12e   :  { %v206_v22 = vpack.c.bf16 %v161_v21, %v160_v20 }
 0x130   :  { %207 = vst [vmem:[#allocation7] sm:$0xff] %v206_v22  }
 0x131   :  { %312 = shalt.err (!%p309_p6)
}
 0x132   :  { %s313_s10 = scalar_lea.hbm %s398_s2, 128 }
 0x133   :  { %p314_p7 = scmp.ne.s32.totalorder %s398_s2, %s313_s10  ;;  %p317_p8 = scmp.lt.u32.totalorder %s313_s10, %s398_s2 }
 0x135   :  { %p319_p9 = pnand %p317_p8, %p314_p7 }
 0x137   :  { %322 = shalt.err (!%p319_p9)
}
 0x138   :  { %183 = dma.vmem_to_hbm [thread:$0]  %s178_s6, 128, %s398_s2, [#allocation4], %s330_s19, %s330_s19, %s331_s20  }
 0x139   :  { %327 = dma.done.wait [#allocation4], 128  }
 0x13a   :  { %328 = vsyncadd [#allocation4], 4294967168 }
 0x13b   :  { %187 = vsyncpa [#allocation3], 1 }
 0x13c   :  { %188 = vsyncpa [#allocation6], 1 }
 0x13d   :  { %189 = vsyncpa [#allocation4], 1 }

</bundles_post_ra>
